<compile_context>
chip_gen: v7x
topology: tpu7x:2x2x1
jax: 0.10.0
libtpu: 0.0.40
codegen_flags: <defaults>
</compile_context>

<pallas_src>
import functools

import jax
import jax.numpy as jnp
from jax.experimental import pallas as pl
from jax.experimental.pallas import tpu as pltpu


def _round_up(x, m):
    return ((x + m - 1) // m) * m


def _fusion_gate_kernel(fr_ref, fi_ref, wr_ref, wi_ref, b_ref, o_ref, *, mxu_dtype):
    # fr/fi: (TILE_B, D) activation tiles.
    # wr/wi: (D, D) weight halves already in (in, out) layout -> plain x @ W.
    # b:     (1, D).
    fr = fr_ref[...]
    fi = fi_ref[...]

    fr_m = fr.astype(mxu_dtype)
    fi_m = fi.astype(mxu_dtype)
    logits = (
        jnp.dot(fr_m, wr_ref[...], preferred_element_type=jnp.float32)
        + jnp.dot(fi_m, wi_ref[...], preferred_element_type=jnp.float32)
        + b_ref[...].astype(jnp.float32)
    )
    gate = jax.nn.sigmoid(logits)  # f32, transcendental goes to the EUP

    fr32 = fr.astype(jnp.float32)
    fi32 = fi.astype(jnp.float32)
    o_ref[...] = (fi32 + gate * (fr32 - fi32)).astype(o_ref.dtype)


def fusion_gate(feat_resnet, feat_inception, weight, bias, *, tile_b=None, mxu_bf16=None):
    """FusionGate forward.

    feat_*: (B, D); weight: (D, 2D) torch nn.Linear layout (out, in); bias: (D,).
    """
    B, D = feat_resnet.shape
    assert feat_inception.shape == (B, D)
    assert weight.shape == (D, 2 * D) and bias.shape == (D,)
    orig_d = D
    out_dtype = feat_resnet.dtype
    in_dtype = feat_resnet.dtype

    # One-time weight re-layout (outside the kernel, amortized over all tiles):
    # split the (out, in) torch weight into two (in, out) halves.
    w_r = weight[:, :D].T  # (D_in, D_out), resnet half
    w_i = weight[:, D:].T  # (D_in, D_out), inception half
    b2d = bias.reshape(1, D)

    # Keep output stores lane-dense: pad the feature dim to a multiple of 128.
    d_pad = _round_up(D, 128)
    if d_pad != D:
        extra = d_pad - D
        feat_resnet = jnp.pad(feat_resnet, ((0, 0), (0, extra)))
        feat_inception = jnp.pad(feat_inception, ((0, 0), (0, extra)))
        w_r = jnp.pad(w_r, ((0, extra), (0, extra)))
        w_i = jnp.pad(w_i, ((0, extra), (0, extra)))
        b2d = jnp.pad(b2d, ((0, 0), (0, extra)))
        D = d_pad

    # bf16 MXU operands for f32 inputs once the matmul starts to matter
    # (v5e: f32 matmuls cost ~3x bf16 passes; sigmoid logits tolerate bf16).
    if mxu_bf16 is None:
        mxu_bf16 = (in_dtype == jnp.float32) and D >= 256
    mxu_dtype = jnp.bfloat16 if mxu_bf16 else in_dtype
    if mxu_bf16:
        w_r = w_r.astype(jnp.bfloat16)
        w_i = w_i.astype(jnp.bfloat16)

    itemsize = jnp.dtype(in_dtype).itemsize
    out_itemsize = jnp.dtype(out_dtype).itemsize
    w_itemsize = jnp.dtype(w_r.dtype).itemsize
    # Sublane packing: 8 rows for f32, 16 for bf16, 32 for int8/fp8.
    sub = max(8, 32 // itemsize)

    if tile_b is None:
        # HBM-bound: target ~4 MiB activation tiles to sit near the roofline.
        target_bytes = 4 * 1024 * 1024
        tile_b = max(sub, min(target_bytes // (D * itemsize), 2048))
        tile_b = _round_up(tile_b, sub)
        tile_b = min(tile_b, _round_up(B, sub))
        # Give both v7x TensorCores work whenever B allows >= 2 grid steps.
        if pl.cdiv(B, tile_b) < 2 and B > sub:
            tile_b = _round_up(pl.cdiv(B, 2), sub)
    grid = (pl.cdiv(B, tile_b),)

    # Explicit VMEM budget (worst case: everything double-buffered).
    needed = (
        2 * 2 * D * D * w_itemsize          # two weight halves
        + 2 * D * 4                          # bias
        + 2 * 2 * tile_b * D * itemsize      # fr + fi tiles
        + 2 * tile_b * D * out_itemsize      # output tile
    )
    vmem_limit = int(min(max(needed * 5 // 4 + (2 << 20), 32 << 20), 64 << 20))

    kernel = functools.partial(_fusion_gate_kernel, mxu_dtype=mxu_dtype)
    out = pl.pallas_call(
        kernel,
        out_shape=jax.ShapeDtypeStruct((B, D), out_dtype),
        grid_spec=pl.GridSpec(
            grid=grid,
            in_specs=[
                pl.BlockSpec((tile_b, D), lambda i: (i, 0)),  # feat_resnet tile
                pl.BlockSpec((tile_b, D), lambda i: (i, 0)),  # feat_inception tile
                pl.BlockSpec((D, D), lambda i: (0, 0)),       # w_r: VMEM-resident
                pl.BlockSpec((D, D), lambda i: (0, 0)),       # w_i: VMEM-resident
                pl.BlockSpec((1, D), lambda i: (0, 0)),       # bias: VMEM-resident
            ],
            out_specs=pl.BlockSpec((tile_b, D), lambda i: (i, 0)),
        ),
        compiler_params=pltpu.CompilerParams(
            dimension_semantics=("parallel",),
            vmem_limit_bytes=vmem_limit,
        ),
    )(feat_resnet, feat_inception, w_r, w_i, b2d)

    if d_pad != orig_d:
        out = out[:, :orig_d]
    return out


def fusion_gate_reference(feat_resnet, feat_inception, weight, bias):
    combined = jnp.concatenate([feat_resnet, feat_inception], axis=1)
    gate = jax.nn.sigmoid(combined @ weight.T + bias)
    return gate * feat_resnet + (1.0 - gate) * feat_inception


def _make_params(key, d):
    k_w, k_b = jax.random.split(key)
    bound = 1.0 / (2 * d) ** 0.5
    weight = jax.random.uniform(k_w, (d, 2 * d), jnp.float32, -bound, bound)
    bias = jax.random.uniform(k_b, (d,), jnp.float32, -bound, bound)
    return weight, bias


if __name__ == "__main__":
    key = jax.random.PRNGKey(0)

    # Case 1: feature_dim=128, tiny batch (single grid step).
    D = 128
    k1, k2, kp = jax.random.split(key, 3)
    weight, bias = _make_params(kp, D)
    B = 8
    fr = jax.random.normal(k1, (B, D), dtype=jnp.float32)
    fi = jax.random.normal(k2, (B, D), dtype=jnp.float32)
    out = fusion_gate(fr, fi, weight, bias)
    jax.block_until_ready(out)
    ref = fusion_gate_reference(fr, fi, weight, bias)
    assert out.shape == (B, D)
    assert jnp.allclose(out, ref, atol=1e-4, rtol=1e-4), "mismatch vs reference (B=8, D=128)"

    # Case 2: multi-tile batch grid (auto tile split -> >= 2 grid steps).
    B2 = 32
    fr2 = jax.random.normal(jax.random.PRNGKey(1), (B2, D), dtype=jnp.float32)
    fi2 = jax.random.normal(jax.random.PRNGKey(2), (B2, D), dtype=jnp.float32)
    out2 = fusion_gate(fr2, fi2, weight, bias)
    jax.block_until_ready(out2)
    ref2 = fusion_gate_reference(fr2, fi2, weight, bias)
    assert jnp.allclose(out2, ref2, atol=1e-4, rtol=1e-4), "mismatch vs reference (B=32, D=128)"

    # Case 3: non-128-multiple feature dim + ragged batch (pad + ragged tile path).
    D3, B3 = 96, 20
    w3, b3 = _make_params(jax.random.PRNGKey(3), D3)
    fr3 = jax.random.normal(jax.random.PRNGKey(4), (B3, D3), dtype=jnp.float32)
    fi3 = jax.random.normal(jax.random.PRNGKey(5), (B3, D3), dtype=jnp.float32)
    out3 = fusion_gate(fr3, fi3, w3, b3)
    jax.block_until_ready(out3)
    ref3 = fusion_gate_reference(fr3, fi3, w3, b3)
    assert out3.shape == (B3, D3)
    assert jnp.allclose(out3, ref3, atol=1e-4, rtol=1e-4), "mismatch vs reference (B=20, D=96)"

    print("KERNEL_OK")
</pallas_src>

<mosaic_0001>
module attributes {stable_mosaic.version = 11 : i64} {
  func.func @_fusion_gate_kernel(%arg0: i32, %arg1: memref<8x128xf32, #tpu.memory_space<vmem>>, %arg2: memref<8x128xf32, #tpu.memory_space<vmem>>, %arg3: memref<128x128xf32, #tpu.memory_space<vmem>>, %arg4: memref<128x128xf32, #tpu.memory_space<vmem>>, %arg5: memref<1x128xf32, #tpu.memory_space<vmem>>, %arg6: memref<8x128xf32, #tpu.memory_space<vmem>>) attributes {dimension_semantics = [#tpu.dimension_semantics<parallel>], iteration_bounds = array<i64: 1>, scalar_prefetch = 0 : i64, scratch_operands = 0 : i64, tpu.core_type = #tpu.core_type<tc>, window_params = [{transform_indices = @transform_0, window_bounds = array<i64: 8, 128>}, {transform_indices = @transform_1, window_bounds = array<i64: 8, 128>}, {pipeline_mode = #tpu.pipeline_mode<synchronous>, transform_indices = @transform_2, window_bounds = array<i64: 128, 128>}, {pipeline_mode = #tpu.pipeline_mode<synchronous>, transform_indices = @transform_3, window_bounds = array<i64: 128, 128>}, {pipeline_mode = #tpu.pipeline_mode<synchronous>, transform_indices = @transform_4, window_bounds = array<i64: 1, 128>}, {transform_indices = @transform_5, window_bounds = array<i64: 8, 128>}]} {
    %c0 = arith.constant 0 : index
    %c0_0 = arith.constant 0 : index
    %0 = vector.load %arg1[%c0, %c0_0] : memref<8x128xf32, #tpu.memory_space<vmem>>, vector<8x128xf32>
    %c0_1 = arith.constant 0 : index
    %c0_2 = arith.constant 0 : index
    %1 = vector.load %arg2[%c0_1, %c0_2] : memref<8x128xf32, #tpu.memory_space<vmem>>, vector<8x128xf32>
    %c0_3 = arith.constant 0 : index
    %c0_4 = arith.constant 0 : index
    %2 = vector.load %arg3[%c0_3, %c0_4] : memref<128x128xf32, #tpu.memory_space<vmem>>, vector<128x128xf32>
    %cst = arith.constant dense<0.000000e+00> : vector<8x128xf32>
    %3 = tpu.matmul %0, %2, %cst {dimension_numbers = #tpu.dot_dimension_numbers<[1], [0], [0], [1], [0, 0, 1, 1], [], []>} : vector<8x128xf32>, vector<128x128xf32>, vector<8x128xf32> -> vector<8x128xf32>
    %c0_5 = arith.constant 0 : index
    %c0_6 = arith.constant 0 : index
    %4 = vector.load %arg4[%c0_5, %c0_6] : memref<128x128xf32, #tpu.memory_space<vmem>>, vector<128x128xf32>
    %cst_7 = arith.constant dense<0.000000e+00> : vector<8x128xf32>
    %5 = tpu.matmul %1, %4, %cst_7 {dimension_numbers = #tpu.dot_dimension_numbers<[1], [0], [0], [1], [0, 0, 1, 1], [], []>} : vector<8x128xf32>, vector<128x128xf32>, vector<8x128xf32> -> vector<8x128xf32>
    %6 = arith.addf %3, %5 : vector<8x128xf32>
    %c0_8 = arith.constant 0 : index
    %c0_9 = arith.constant 0 : index
    %7 = vector.load %arg5[%c0_8, %c0_9] : memref<1x128xf32, #tpu.memory_space<vmem>>, vector<1x128xf32>
    %8 = vector.broadcast %7 : vector<1x128xf32> to vector<8x128xf32>
    %9 = arith.addf %6, %8 : vector<8x128xf32>
    %10 = arith.negf %9 : vector<8x128xf32>
    %11 = math.exp %10 : vector<8x128xf32>
    %cst_10 = arith.constant 1.000000e+00 : f32
    %12 = vector.broadcast %cst_10 : f32 to vector<8x128xf32>
    %13 = arith.addf %12, %11 : vector<8x128xf32>
    %14 = arith.divf %12, %13 : vector<8x128xf32>
    %15 = arith.subf %0, %1 : vector<8x128xf32>
    %16 = arith.mulf %14, %15 : vector<8x128xf32>
    %17 = arith.addf %1, %16 : vector<8x128xf32>
    %c0_11 = arith.constant 0 : index
    %c0_12 = arith.constant 0 : index
    %18 = vector.load %arg6[%c0_11, %c0_12] : memref<8x128xf32, #tpu.memory_space<vmem>>, vector<8x128xf32>
    tpu.vector_store %arg6[%c0_11, %c0_12], %17 {strides = array<i32>} : memref<8x128xf32, #tpu.memory_space<vmem>>, vector<8x128xf32>,
    return
  }
  func.func @transform_0(%arg0: i32) -> (i32, i32) {
    %c0_i32 = arith.constant 0 : i32
    %c0_i32_0 = arith.constant 0 : i32
    return %arg0, %c0_i32 : i32, i32
  }
  func.func @transform_1(%arg0: i32) -> (i32, i32) {
    %c0_i32 = arith.constant 0 : i32
    %c0_i32_0 = arith.constant 0 : i32
    return %arg0, %c0_i32 : i32, i32
  }
  func.func @transform_2(%arg0: i32) -> (i32, i32) {
    %c0_i32 = arith.constant 0 : i32
    %c0_i32_0 = arith.constant 0 : i32
    %c0_i32_1 = arith.constant 0 : i32
    return %c0_i32, %c0_i32_0 : i32, i32
  }
  func.func @transform_3(%arg0: i32) -> (i32, i32) {
    %c0_i32 = arith.constant 0 : i32
    %c0_i32_0 = arith.constant 0 : i32
    %c0_i32_1 = arith.constant 0 : i32
    return %c0_i32, %c0_i32_0 : i32, i32
  }
  func.func @transform_4(%arg0: i32) -> (i32, i32) {
    %c0_i32 = arith.constant 0 : i32
    %c0_i32_0 = arith.constant 0 : i32
    %c0_i32_1 = arith.constant 0 : i32
    return %c0_i32, %c0_i32_0 : i32, i32
  }
  func.func @transform_5(%arg0: i32) -> (i32, i32) {
    %c0_i32 = arith.constant 0 : i32
    %c0_i32_0 = arith.constant 0 : i32
    return %arg0, %c0_i32 : i32, i32
  }
}

</mosaic_0001>

<bundles_post_ra>
// kernel: tpu_custom_call.1
= control target key start
LH: loop header
LB: loop body
LE: loop exit
PB: predicated region body
PF: predicated region fallthrough
CT: control target
= control target key end

     0   :  { %10 = vsyncpa [#allocation3], 0  ;;  %s686_s0 = inlined_call_operand.hbm [shape: f32[8,128], index: 0, kind: input, shape index: {}]   ;;  %s687_s1 = inlined_call_operand.hbm [shape: f32[8,128], index: 1, kind: input, shape index: {}]   ;;  %s688_s2 = inlined_call_operand.hbm [shape: f32[128,128], index: 2, kind: input, shape index: {}]   ;;  %s689_s3 = inlined_call_operand.hbm [shape: f32[128,128], index: 3, kind: input, shape index: {}]   ;;  %s690_s4 = inlined_call_operand.vmem [shape: f32[1,128], index: 4, kind: input, shape index: {}]   ;;  %s691_s5 = inlined_call_operand.hbm [shape: f32[8,128], index: 5, kind: output, shape index: {}]  }
   0x1   :  { %11 = vsyncpa [#allocation6], 0 }
   0x2   :  { %12 = vsyncpa [#allocation9], 0 }
   0x3   :  { %13 = vsyncpa [#allocation4], 0  ;;  %s567_s18 = smov [#allocation5]   ;;  %s568_s20 = smov [#allocation2]  }
   0x4   :  { %s30_s19 = sshll.u32 %s567_s18, 4  ;;  %s20_s21 = sshll.u32 %s568_s20, 4  ;;  %s31_s19 = int_to_ptr.vmem [resolvable:$true] %s30_s19  ;;  %s21_s21 = int_to_ptr.vmem [resolvable:$true] %s20_s21 }
   0x5   :  { %s449_s24 = scalar_lea.hbm %s687_s1, 128 }
   0x6   :  { %p450_p0 = scmp.ne.s32.totalorder %s687_s1, %s449_s24  ;;  %p453_p1 = scmp.lt.u32.totalorder %s449_s24, %s687_s1 }
   0x8   :  { %p455_p2 = pnand %p453_p1, %p450_p0 }
   0xa   :  { %458 = shalt.err (!%p455_p2)
}
   0xb   :  { %s459_s29 = scalar_lea.vmem %s31_s19, 128  ;;  %p464_p4 = scmp.lt.s32.totalorder %s31_s19, %s31_s19 }
   0xc   :  { %p460_p3 = scmp.ne.s32.totalorder %s31_s19, %s459_s29  ;;  %p465_p5 = scmp.lt.s32.totalorder %s459_s29, %s459_s29 }
   0xe   :  { %p466_p6 = por %p465_p5, %p464_p4 }
  0x10   :  { %p467_p7 = pnand %p466_p6, %p460_p3 }
  0x12   :  { %470 = shalt.err (!%p467_p7)
}
  0x13   :  { %33 = dma.hbm_to_vmem [thread:$0]  %s687_s1, 128, %s31_s19, [#allocation6]  }
  0x14   :  { %s471_s9 = scalar_lea.hbm %s686_s0, 128 }
  0x15   :  { %p472_p8 = scmp.ne.s32.totalorder %s686_s0, %s471_s9  ;;  %p475_p9 = scmp.lt.u32.totalorder %s471_s9, %s686_s0 }
  0x17   :  { %p477_p10 = pnand %p475_p9, %p472_p8 }
  0x19   :  { %480 = shalt.err (!%p477_p10)
}
  0x1a   :  { %s481_s14 = scalar_lea.vmem %s21_s21, 128  ;;  %p486_p12 = scmp.lt.s32.totalorder %s21_s21, %s21_s21 }
  0x1b   :  { %p482_p11 = scmp.ne.s32.totalorder %s21_s21, %s481_s14  ;;  %p487_p13 = scmp.lt.s32.totalorder %s481_s14, %s481_s14 }
  0x1d   :  { %p488_p0 = por %p487_p13, %p486_p12 }
  0x1f   :  { %p489_p1 = pnand %p488_p0, %p482_p11 }
  0x21   :  { %492 = shalt.err (!%p489_p1)
}
  0x22   :  { %23 = dma.hbm_to_vmem [thread:$0]  %s686_s0, 128, %s21_s21, [#allocation3]  }
  0x23   :  { %s569_s16 = smov [#allocation7]   ;;  %s493_s20 = scalar_lea.hbm %s688_s2, 2048 }
  0x24   :  { %s39_s17 = sshll.u32 %s569_s16, 4  ;;  %p494_p2 = scmp.ne.s32.totalorder %s688_s2, %s493_s20  ;;  %s40_s17 = int_to_ptr.vmem [resolvable:$true] %s39_s17 }
  0x25   :  { %p497_p3 = scmp.lt.u32.totalorder %s493_s20, %s688_s2 }
  0x27   :  { %p499_p4 = pnand %p497_p3, %p494_p2 }
  0x29   :  { %502 = shalt.err (!%p499_p4)
}
  0x2a   :  { %s503_s26 = scalar_lea.vmem %s40_s17, 2048  ;;  %p508_p6 = scmp.lt.s32.totalorder %s40_s17, %s40_s17 }
  0x2b   :  { %p504_p5 = scmp.ne.s32.totalorder %s40_s17, %s503_s26  ;;  %p509_p7 = scmp.lt.s32.totalorder %s503_s26, %s503_s26 }
  0x2d   :  { %p510_p8 = por %p509_p7, %p508_p6 }
  0x2f   :  { %p511_p9 = pnand %p510_p8, %p504_p5 }
  0x31   :  { %514 = shalt.err (!%p511_p9)
}
  0x32   :  { %s570_s0 = smov 128   ;;  %s571_s21 = smov 8  }
  0x33   :  { %45 = dma.hbm_to_vmem [thread:$0]  %s688_s2, 2048, %s40_s17, [#allocation6], %s570_s0, %s570_s0, %s571_s21  }
  0x34   :  { %s572_s29 = smov [#allocation8]   ;;  %s515_s8 = scalar_lea.hbm %s689_s3, 2048 }
  0x35   :  { %s51_s30 = sshll.u32 %s572_s29, 4  ;;  %p516_p10 = scmp.ne.s32.totalorder %s689_s3, %s515_s8  ;;  %s52_s30 = int_to_ptr.vmem [resolvable:$true] %s51_s30 }
  0x36   :  { %p519_p11 = scmp.lt.u32.totalorder %s515_s8, %s689_s3 }
  0x38   :  { %p521_p12 = pnand %p519_p11, %p516_p10 }
  0x3a   :  { %524 = shalt.err (!%p521_p12)
}
  0x3b   :  { %s525_s13 = scalar_lea.vmem %s52_s30, 2048  ;;  %p530_p0 = scmp.lt.s32.totalorder %s52_s30, %s52_s30 }
  0x3c   :  { %p526_p13 = scmp.ne.s32.totalorder %s52_s30, %s525_s13  ;;  %p531_p1 = scmp.lt.s32.totalorder %s525_s13, %s525_s13 }
  0x3e   :  { %p532_p2 = por %p531_p1, %p530_p0 }
  0x40   :  { %p533_p3 = pnand %p532_p2, %p526_p13 }
  0x42   :  { %536 = shalt.err (!%p533_p3)
}
  0x43   :  { %57 = dma.hbm_to_vmem [thread:$0]  %s689_s3, 2048, %s52_s30, [#allocation9], %s570_s0, %s570_s0, %s571_s21  }
  0x44   :  { %559 = dma.done.wait [#allocation3], 128  }
  0x45   :  { %560 = vsyncadd [#allocation3], 4294967168 }
  0x46   :  { %561 = dma.done.wait [#allocation6], 2176  }
  0x47   :  { %562 = vsyncadd [#allocation6], 4294965120 }
  0x48   :  { %563 = dma.done.wait [#allocation9], 2048  }
  0x49   :  { %564 = vsyncadd [#allocation9], 4294965248  ;;  %v573_v0 = vmov 0.0|0.0   ;;  %vm574_vm0 = vmmov 0   ;;  %v575_v1 = vmov 0.0   ;;  %v90_v2 = vld [vmem:[#allocation8] sm:$0xff] }
  0x4a   :  { %387 = vmatprep.subr.bf16.mxu0 %v573_v0  ;;  %411 = vmatprep.subr.bf16.mxu1 %v573_v0  ;;  %v91_v3 = vld [vmem:[#allocation8 + $0x8] sm:$0xff]  ;;  %v74_v4 = vld [vmem:[#allocation7] sm:$0xff]  ;;  %v92_v7 = vld [vmem:[#allocation8 + $0x10] sm:$0xff]  ;;  %s576_s15 = smov [#allocation10]  }
  0x4b   :  { %349 = vmatprep.mubr.msk.f32.mxu0 %vm574_vm0, %v575_v1  ;;  %384 = vmatprep.mubr.msk.f32.mxu1 %vm574_vm0, %v575_v1  ;;  %v388_v5 = vpack.c.bf16 %v91_v3, %v90_v2  ;;  %v75_v6 = vld [vmem:[#allocation7 + $0x8] sm:$0xff]  ;;  %v93_v8 = vld [vmem:[#allocation8 + $0x18] sm:$0xff]  ;;  %v76_v10 = vld [vmem:[#allocation7 + $0x10] sm:$0xff]  ;;  %s270_s16 = sshll.u32 %s576_s15, 4  ;;  %s271_s16 = int_to_ptr.vmem [resolvable:$true] %s270_s16 }
  0x4c   :  { %v412_v9 = vpack.c.bf16 %v75_v6, %v74_v4  ;;  %v77_v11 = vld [vmem:[#allocation7 + $0x18] sm:$0xff]  ;;  %v391_v12 = vpack.c.bf16 %v93_v8, %v92_v7  ;;  %v94_v14 = vld [vmem:[#allocation8 + $0x20] sm:$0xff]  ;;  %v95_v15 = vld [vmem:[#allocation8 + $0x28] sm:$0xff]  ;;  %s537_s17 = scalar_lea.vmem %s271_s16, 128  ;;  %p542_p5 = scmp.lt.s32.totalorder %s271_s16, %s271_s16 }
  0x4d   :  { %389 = vmatpush3.bf16.msra.mxu0 %v388_v5  ;;  %v415_v13 = vpack.c.bf16 %v77_v11, %v76_v10  ;;  %v78_v16 = vld [vmem:[#allocation7 + $0x20] sm:$0xff]  ;;  %v79_v17 = vld [vmem:[#allocation7 + $0x28] sm:$0xff]  ;;  %v394_v18 = vpack.c.bf16 %v95_v15, %v94_v14  ;;  %v96_v20 = vld [vmem:[#allocation8 + $0x30] sm:$0xff]  ;;  %p538_p4 = scmp.ne.s32.totalorder %s271_s16, %s537_s17  ;;  %p543_p6 = scmp.lt.s32.totalorder %s537_s17, %s537_s17 }
  0x4e   :  { %413 = vmatpush3.bf16.msra.mxu1 %v412_v9  ;;  %390 = vmatprep.subr.bf16.mxu0 %v573_v0  ;;  %v418_v19 = vpack.c.bf16 %v79_v17, %v78_v16  ;;  %v97_v21 = vld [vmem:[#allocation8 + $0x38] sm:$0xff]  ;;  %v80_v22 = vld [vmem:[#allocation7 + $0x30] sm:$0xff]  ;;  %v98_v26 = vld [vmem:[#allocation8 + $0x40] sm:$0xff] }
  0x4f   :  { %414 = vmatprep.subr.bf16.mxu1 %v573_v0  ;;  %v81_v23 = vld [vmem:[#allocation7 + $0x38] sm:$0xff]  ;;  %v397_v24 = vpack.c.bf16 %v97_v21, %v96_v20  ;;  %v99_v27 = vld [vmem:[#allocation8 + $0x48] sm:$0xff]  ;;  %v82_v28 = vld [vmem:[#allocation7 + $0x40] sm:$0xff]  ;;  %p544_p7 = por %p543_p6, %p542_p5 }
  0x50   :  { %v421_v25 = vpack.c.bf16 %v81_v23, %v80_v22  ;;  %v83_v29 = vld [vmem:[#allocation7 + $0x48] sm:$0xff]  ;;  %v400_v30 = vpack.c.bf16 %v99_v27, %v98_v26  ;;  %v100_v32 = vld [vmem:[#allocation8 + $0x50] sm:$0xff]  ;;  %v101_v33 = vld [vmem:[#allocation8 + $0x58] sm:$0xff] }
  0x51   :  { %392 = vmatpush3.bf16.msra.mxu0 %v391_v12  ;;  %v424_v31 = vpack.c.bf16 %v83_v29, %v82_v28  ;;  %v84_v34 = vld [vmem:[#allocation7 + $0x50] sm:$0xff]  ;;  %v85_v35 = vld [vmem:[#allocation7 + $0x58] sm:$0xff]  ;;  %v403_v36 = vpack.c.bf16 %v101_v33, %v100_v32  ;;  %v102_v38 = vld [vmem:[#allocation8 + $0x60] sm:$0xff]  ;;  %p545_p8 = pnand %p544_p7, %p538_p4 }
  0x52   :  { %416 = vmatpush3.bf16.msra.mxu1 %v415_v13  ;;  %393 = vmatprep.subr.bf16.mxu0 %v573_v0  ;;  %v427_v37 = vpack.c.bf16 %v85_v35, %v84_v34  ;;  %v103_v39 = vld [vmem:[#allocation8 + $0x68] sm:$0xff]  ;;  %v86_v40 = vld [vmem:[#allocation7 + $0x60] sm:$0xff]  ;;  %v104_v44 = vld [vmem:[#allocation8 + $0x70] sm:$0xff] }
  0x53   :  { %417 = vmatprep.subr.bf16.mxu1 %v573_v0  ;;  %v87_v41 = vld [vmem:[#allocation7 + $0x68] sm:$0xff]  ;;  %v406_v42 = vpack.c.bf16 %v103_v39, %v102_v38  ;;  %v105_v45 = vld [vmem:[#allocation8 + $0x78] sm:$0xff]  ;;  %v88_v46 = vld [vmem:[#allocation7 + $0x70] sm:$0xff] }
  0x54   :  { %v430_v43 = vpack.c.bf16 %v87_v41, %v86_v40  ;;  %v89_v47 = vld [vmem:[#allocation7 + $0x78] sm:$0xff]  ;;  %v409_v48 = vpack.c.bf16 %v105_v45, %v104_v44  ;;  %v72_v51 = vld [vmem:[#allocation2] sm:$0xff] }
  0x55   :  { %395 = vmatpush3.bf16.msra.mxu0 %v394_v18  ;;  %v433_v49 = vpack.c.bf16 %v89_v47, %v88_v46  ;;  %v73_v50 = vld [vmem:[#allocation5] sm:$0xff]  ;;  %v281_v54 = vld [vmem:[%s690_s4] ss:$0 sm:$0xff] }
  0x56   :  { %419 = vmatpush3.bf16.msra.mxu1 %v418_v19  ;;  %396 = vmatprep.subr.bf16.mxu0 %v573_v0  ;;  %v260_v62 = vsub.f32 %v72_v51, %v73_v50 }
  0x57   :  { %420 = vmatprep.subr.bf16.mxu1 %v573_v0 }
  0x59   :  { %398 = vmatpush3.bf16.msra.mxu0 %v397_v24 }
  0x5a   :  { %422 = vmatpush3.bf16.msra.mxu1 %v421_v25  ;;  %399 = vmatprep.subr.bf16.mxu0 %v573_v0 }
  0x5b   :  { %423 = vmatprep.subr.bf16.mxu1 %v573_v0 }
  0x5d   :  { %401 = vmatpush3.bf16.msra.mxu0 %v400_v30 }
  0x5e   :  { %425 = vmatpush3.bf16.msra.mxu1 %v424_v31  ;;  %402 = vmatprep.subr.bf16.mxu0 %v573_v0 }
  0x5f   :  { %426 = vmatprep.subr.bf16.mxu1 %v573_v0 }
  0x61   :  { %404 = vmatpush3.bf16.msra.mxu0 %v403_v36 }
  0x62   :  { %428 = vmatpush3.bf16.msra.mxu1 %v427_v37  ;;  %405 = vmatprep.subr.bf16.mxu0 %v573_v0 }
  0x63   :  { %429 = vmatprep.subr.bf16.mxu1 %v573_v0 }
  0x65   :  { %407 = vmatpush3.bf16.msra.mxu0 %v406_v42 }
  0x66   :  { %431 = vmatpush3.bf16.msra.mxu1 %v430_v43  ;;  %408 = vmatprep.subr.bf16.mxu0 %v573_v0 }
  0x67   :  { %432 = vmatprep.subr.bf16.mxu1 %v573_v0 }
  0x69   :  { %410 = vmatpush3.bf16.msra.mxu0 %v409_v48 }
  0x6a   :  { %434 = vmatpush3.bf16.msra.mxu1 %v433_v49 }
  0x6c   :  { %350 = vmatmul.mubr.f32.vlgmr.msra.gmra.mrb[0].mxu0 %v73_v50 }
  0x6d   :  { %385 = vmatmul.mubr.f32.vlgmr.msra.gmra.mrb[0].mxu1 %v72_v51 }
 0x13f   :  { %v172_v52 = vpop.f32.mrb[0].mxu0 }
 0x140   :  { %v242_v53 = vpop.f32.mrb[0].mxu1  ;;  %v351_v55 = vpop.f32.mrb[1].mxu0 }
 0x141   :  { %v243_v56 = vadd.f32 %v242_v53, %v172_v52  ;;  %v386_v57 = vpop.f32.mrb[1].mxu1 }
 0x143   :  { %v253_v58 = vadd.f32 %v281_v54, %v243_v56 }
 0x145   :  { %v282_v59 = vmul.f32 -1.442695, %v253_v58 }
 0x147   :  { %445 = vpow2.f32 %v282_v59 }
 0x151   :  { %v446_v60 = vpop.eup %445 }
 0x152   :  { %v257_v61 = vadd.f32 1.0, %v446_v60 }
 0x154   :  { %447 = vrcp.f32 %v257_v61 }
 0x15e   :  { %v448_v63 = vpop.eup %447 }
 0x15f   :  { %v261_v0 = vmul.f32 %v448_v63, %v260_v62 }
 0x161   :  { %v262_v1 = vadd.f32 %v261_v0, %v73_v50 }
 0x163   :  { %263 = vst [vmem:[#allocation10] sm:$0xff] %v262_v1 }
 0x164   :  { %548 = shalt.err (!%p545_p8)
}
 0x165   :  { %s549_s19 = scalar_lea.hbm %s691_s5, 128 }
 0x166   :  { %p550_p9 = scmp.ne.s32.totalorder %s691_s5, %s549_s19  ;;  %p553_p10 = scmp.lt.u32.totalorder %s549_s19, %s691_s5 }
 0x168   :  { %p555_p11 = pnand %p553_p10, %p550_p9 }
 0x16a   :  { %558 = shalt.err (!%p555_p11)
}
 0x16b   :  { %273 = dma.vmem_to_hbm [thread:$0]  %s271_s16, 128, %s691_s5, [#allocation4]  }
 0x16c   :  { %565 = dma.done.wait [#allocation4], 128  }
 0x16d   :  { %566 = vsyncadd [#allocation4], 4294967168 }
 0x16e   :  { %277 = vsyncpa [#allocation3], 1 }
 0x16f   :  { %278 = vsyncpa [#allocation6], 1 }
 0x170   :  { %279 = vsyncpa [#allocation9], 1 }
 0x171   :  { %280 = vsyncpa [#allocation4], 1 }

</bundles_post_ra>
